<compile_context>
chip_gen: v5e
topology: v5e:2x2
jax: 0.10.0
libtpu: 0.0.40
codegen_flags: <defaults>
</compile_context>

<pallas_src>
import functools

import jax
import jax.numpy as jnp
from jax.experimental import pallas as pl
from jax.experimental.pallas import tpu as pltpu

_BF16_SUBLANE = 16  # native bf16 sublane tile height


def _round_up(n, m):
    return ((n + m - 1) // m) * m


def _cdiv(a, b):
    return -(-a // b)


def _plan_batch_tiling(B, tile_b_target):
    """Pick (tile_b, b_pad, n_tiles) with minimal tail padding, 16-aligned tiles.

    For B >= 32 we guarantee at least 2 grid steps so the 'parallel' batch
    axis can shard across both TensorCores on v7x.
    """
    n_tiles = max(1, _cdiv(B, tile_b_target))
    if B >= 2 * _BF16_SUBLANE:
        n_tiles = max(n_tiles, 2)
    tile_b = _round_up(_cdiv(B, n_tiles), _BF16_SUBLANE)
    b_pad = n_tiles * tile_b
    return tile_b, b_pad, n_tiles


def _dqn_mlp_kernel(x_ref,
                    w1_ref, b1_ref,
                    w2_ref, b2_ref,
                    w3_ref, b3_ref,
                    w4_ref, b4_ref,
                    o_ref):
    # x arrives f32; cast to bf16 in-kernel (MXU-native inputs, f32 accumulate).
    x = x_ref[...].astype(jnp.bfloat16)

    h = jnp.dot(x, w1_ref[...],
                preferred_element_type=jnp.float32) + b1_ref[...]
    h = jnp.maximum(h, 0.0).astype(jnp.bfloat16)

    h = jnp.dot(h, w2_ref[...],
                preferred_element_type=jnp.float32) + b2_ref[...]
    h = jnp.maximum(h, 0.0).astype(jnp.bfloat16)

    h = jnp.dot(h, w3_ref[...],
                preferred_element_type=jnp.float32) + b3_ref[...]
    h = jnp.maximum(h, 0.0).astype(jnp.bfloat16)

    q = jnp.dot(h, w4_ref[...],
                preferred_element_type=jnp.float32) + b4_ref[...]
    o_ref[...] = q.astype(o_ref.dtype)


def prepare_params(params):
    """One-time per parameter update: bf16 casts + action-dim padding (4 -> 8).

    params: list of (W, b) with W:(in, out), b:(1, out) f32.
    Returns a tuple of 8 arrays ready to feed dqn_forward.
    """
    (w1, b1), (w2, b2), (w3, b3), (w4, b4) = params
    hidden = w4.shape[0]
    action_size = w4.shape[1]
    action_pad = _round_up(action_size, 8)

    w4_p = jnp.zeros((hidden, action_pad), jnp.bfloat16)
    w4_p = w4_p.at[:, :action_size].set(w4.astype(jnp.bfloat16))
    b4_p = jnp.zeros((1, action_pad), jnp.float32)
    b4_p = b4_p.at[:, :action_size].set(b4.reshape(1, -1).astype(jnp.float32))

    return (w1.astype(jnp.bfloat16), b1.reshape(1, -1).astype(jnp.float32),
            w2.astype(jnp.bfloat16), b2.reshape(1, -1).astype(jnp.float32),
            w3.astype(jnp.bfloat16), b3.reshape(1, -1).astype(jnp.float32),
            w4_p, b4_p)


@functools.partial(jax.jit, static_argnames=("action_size", "tile_b_target"))
def dqn_forward(x, prepared, *, action_size, tile_b_target=1024):
    """x: (B, state_size) f32. prepared: output of prepare_params. -> (B, action_size) f32."""
    w1, b1, w2, b2, w3, b3, w4, b4 = prepared
    B, state_size = x.shape
    hidden = w1.shape[1]
    action_pad = w4.shape[1]

    tile_b, b_pad, n_tiles = _plan_batch_tiling(B, tile_b_target)

    # Only batch-dim padding (f32, no lane padding) — cheap, fuses with the copy.
    if b_pad > B:
        x_p = jnp.pad(x, ((0, b_pad - B), (0, 0)))
    else:
        x_p = x

    # Weights/biases: full-array blocks, constant index_map -> VMEM-resident
    # across all grid steps (DMA'd once).
    def resident(a):
        return pl.BlockSpec(a.shape, lambda i, nd=a.ndim: (0,) * nd)

    flops = 2 * b_pad * (state_size * hidden
                         + hidden * hidden
                         + hidden * hidden
                         + hidden * action_pad)
    bytes_accessed = (b_pad * state_size * 4                                # x (f32)
                      + (w1.size + w2.size + w3.size + w4.size) * 2        # bf16 weights
                      + (b1.size + b2.size + b3.size + b4.size) * 4        # f32 biases
                      + b_pad * action_pad * 4)                            # out (f32)

    out = pl.pallas_call(
        _dqn_mlp_kernel,
        out_shape=jax.ShapeDtypeStruct((b_pad, action_pad), jnp.float32),
        grid_spec=pltpu.PrefetchScalarGridSpec(
            num_scalar_prefetch=0,
            grid=(n_tiles,),
            in_specs=[pl.BlockSpec((tile_b, state_size), lambda i: (i, 0)),
                      resident(w1), resident(b1),
                      resident(w2), resident(b2),
                      resident(w3), resident(b3),
                      resident(w4), resident(b4)],
            out_specs=pl.BlockSpec((tile_b, action_pad), lambda i: (i, 0)),
        ),
        compiler_params=pltpu.CompilerParams(
            dimension_semantics=("parallel",)),
        cost_estimate=pl.CostEstimate(
            flops=flops, transcendentals=0, bytes_accessed=bytes_accessed),
    )(x_p, w1, b1, w2, b2, w3, b3, w4, b4)

    return out[:B, :action_size]


def init_params(key, state_size, action_size, hidden_size=128):
    """Deterministic init mirroring nn.Linear's U(-1/sqrt(fan_in), 1/sqrt(fan_in))."""
    dims = [(state_size, hidden_size),
            (hidden_size, hidden_size),
            (hidden_size, hidden_size),
            (hidden_size, action_size)]
    params = []
    for (fan_in, fan_out) in dims:
        key, kw, kb = jax.random.split(key, 3)
        bound = 1.0 / jnp.sqrt(jnp.float32(fan_in))
        W = jax.random.uniform(kw, (fan_in, fan_out), jnp.float32, -bound, bound)
        b = jax.random.uniform(kb, (1, fan_out), jnp.float32, -bound, bound)
        params.append((W, b))
    return params


def reference_forward_f32(x, params):
    h = x
    for i, (W, b) in enumerate(params):
        h = h @ W + b
        if i < len(params) - 1:
            h = jnp.maximum(h, 0.0)
    return h


def reference_forward_bf16(x, params):
    # Mirrors the kernel's numerics: bf16 matmul inputs, f32 accumulation,
    # f32 bias/ReLU.
    h = x
    for i, (W, b) in enumerate(params):
        h = jnp.dot(h.astype(jnp.bfloat16), W.astype(jnp.bfloat16),
                    preferred_element_type=jnp.float32) + b
        if i < len(params) - 1:
            h = jnp.maximum(h, 0.0)
    return h


if __name__ == "__main__":
    state_size = 16
    action_size = 4
    hidden_size = 128

    key = jax.random.PRNGKey(0)
    key, kx, kx2 = jax.random.split(key, 3)
    params = init_params(key, state_size, action_size, hidden_size)
    prepared = prepare_params(params)

    # Small inference-style batch (single grid step).
    batch = 2
    x = jax.random.normal(kx, (batch, state_size), jnp.float32)
    q = dqn_forward(x, prepared, action_size=action_size)
    q = jax.block_until_ready(q)
    assert q.shape == (batch, action_size)

    q_ref_bf16 = reference_forward_bf16(x, params)
    assert jnp.allclose(q, q_ref_bf16, atol=2e-3, rtol=2e-3), (
        jnp.max(jnp.abs(q - q_ref_bf16)))
    q_ref_f32 = reference_forward_f32(x, params)
    assert jnp.allclose(q, q_ref_f32, atol=5e-2, rtol=5e-2), (
        jnp.max(jnp.abs(q - q_ref_f32)))

    # Slightly larger batch: exercises the multi-tile (>=2 grid step) path
    # with a non-tile-multiple batch (tail padding <= 15 rows).
    batch2 = 40
    x2 = jax.random.normal(kx2, (batch2, state_size), jnp.float32)
    q2 = dqn_forward(x2, prepared, action_size=action_size)
    q2 = jax.block_until_ready(q2)
    assert q2.shape == (batch2, action_size)
    q2_ref_bf16 = reference_forward_bf16(x2, params)
    assert jnp.allclose(q2, q2_ref_bf16, atol=2e-3, rtol=2e-3), (
        jnp.max(jnp.abs(q2 - q2_ref_bf16)))

    print("KERNEL_OK")
</pallas_src>

<mosaic_0001>
module attributes {stable_mosaic.version = 11 : i64} {
  func.func @_dqn_mlp_kernel(%arg0: i32, %arg1: memref<16x16xf32, #tpu.memory_space<vmem>>, %arg2: memref<16x128xbf16, #tpu.memory_space<vmem>>, %arg3: memref<1x128xf32, #tpu.memory_space<vmem>>, %arg4: memref<128x128xbf16, #tpu.memory_space<vmem>>, %arg5: memref<1x128xf32, #tpu.memory_space<vmem>>, %arg6: memref<128x128xbf16, #tpu.memory_space<vmem>>, %arg7: memref<1x128xf32, #tpu.memory_space<vmem>>, %arg8: memref<128x8xbf16, #tpu.memory_space<vmem>>, %arg9: memref<1x8xf32, #tpu.memory_space<vmem>>, %arg10: memref<16x8xf32, #tpu.memory_space<vmem>>) attributes {dimension_semantics = [#tpu.dimension_semantics<parallel>], iteration_bounds = array<i64: 1>, scalar_prefetch = 0 : i64, scratch_operands = 0 : i64, tpu.core_type = #tpu.core_type<tc>, window_params = [{transform_indices = @transform_0, window_bounds = array<i64: 16, 16>}, {pipeline_mode = #tpu.pipeline_mode<synchronous>, transform_indices = @transform_1, window_bounds = array<i64: 16, 128>}, {pipeline_mode = #tpu.pipeline_mode<synchronous>, transform_indices = @transform_2, window_bounds = array<i64: 1, 128>}, {pipeline_mode = #tpu.pipeline_mode<synchronous>, transform_indices = @transform_3, window_bounds = array<i64: 128, 128>}, {pipeline_mode = #tpu.pipeline_mode<synchronous>, transform_indices = @transform_4, window_bounds = array<i64: 1, 128>}, {pipeline_mode = #tpu.pipeline_mode<synchronous>, transform_indices = @transform_5, window_bounds = array<i64: 128, 128>}, {pipeline_mode = #tpu.pipeline_mode<synchronous>, transform_indices = @transform_6, window_bounds = array<i64: 1, 128>}, {pipeline_mode = #tpu.pipeline_mode<synchronous>, transform_indices = @transform_7, window_bounds = array<i64: 128, 8>}, {pipeline_mode = #tpu.pipeline_mode<synchronous>, transform_indices = @transform_8, window_bounds = array<i64: 1, 8>}, {transform_indices = @transform_9, window_bounds = array<i64: 16, 8>}]} {
    %c0 = arith.constant 0 : index
    %c0_0 = arith.constant 0 : index
    %0 = vector.load %arg1[%c0, %c0_0] : memref<16x16xf32, #tpu.memory_space<vmem>>, vector<16x16xf32>
    %1 = arith.truncf %0 : vector<16x16xf32> to vector<16x16xbf16>
    %c0_1 = arith.constant 0 : index
    %c0_2 = arith.constant 0 : index
    %2 = vector.load %arg2[%c0_1, %c0_2] : memref<16x128xbf16, #tpu.memory_space<vmem>>, vector<16x128xbf16>
    %cst = arith.constant dense<0.000000e+00> : vector<16x128xf32>
    %3 = tpu.matmul %1, %2, %cst {dimension_numbers = #tpu.dot_dimension_numbers<[1], [0], [0], [1], [0, 0, 1, 1], [], []>} : vector<16x16xbf16>, vector<16x128xbf16>, vector<16x128xf32> -> vector<16x128xf32>
    %c0_3 = arith.constant 0 : index
    %c0_4 = arith.constant 0 : index
    %4 = vector.load %arg3[%c0_3, %c0_4] : memref<1x128xf32, #tpu.memory_space<vmem>>, vector<1x128xf32>
    %5 = vector.broadcast %4 : vector<1x128xf32> to vector<16x128xf32>
    %6 = arith.addf %3, %5 : vector<16x128xf32>
    %cst_5 = arith.constant 0.000000e+00 : f32
    %7 = vector.broadcast %cst_5 : f32 to vector<16x128xf32>
    %8 = arith.maximumf %6, %7 : vector<16x128xf32>
    %9 = arith.truncf %8 : vector<16x128xf32> to vector<16x128xbf16>
    %c0_6 = arith.constant 0 : index
    %c0_7 = arith.constant 0 : index
    %10 = vector.load %arg4[%c0_6, %c0_7] : memref<128x128xbf16, #tpu.memory_space<vmem>>, vector<128x128xbf16>
    %cst_8 = arith.constant dense<0.000000e+00> : vector<16x128xf32>
    %11 = tpu.matmul %9, %10, %cst_8 {dimension_numbers = #tpu.dot_dimension_numbers<[1], [0], [0], [1], [0, 0, 1, 1], [], []>} : vector<16x128xbf16>, vector<128x128xbf16>, vector<16x128xf32> -> vector<16x128xf32>
    %c0_9 = arith.constant 0 : index
    %c0_10 = arith.constant 0 : index
    %12 = vector.load %arg5[%c0_9, %c0_10] : memref<1x128xf32, #tpu.memory_space<vmem>>, vector<1x128xf32>
    %13 = vector.broadcast %12 : vector<1x128xf32> to vector<16x128xf32>
    %14 = arith.addf %11, %13 : vector<16x128xf32>
    %cst_11 = arith.constant 0.000000e+00 : f32
    %15 = vector.broadcast %cst_11 : f32 to vector<16x128xf32>
    %16 = arith.maximumf %14, %15 : vector<16x128xf32>
    %17 = arith.truncf %16 : vector<16x128xf32> to vector<16x128xbf16>
    %c0_12 = arith.constant 0 : index
    %c0_13 = arith.constant 0 : index
    %18 = vector.load %arg6[%c0_12, %c0_13] : memref<128x128xbf16, #tpu.memory_space<vmem>>, vector<128x128xbf16>
    %cst_14 = arith.constant dense<0.000000e+00> : vector<16x128xf32>
    %19 = tpu.matmul %17, %18, %cst_14 {dimension_numbers = #tpu.dot_dimension_numbers<[1], [0], [0], [1], [0, 0, 1, 1], [], []>} : vector<16x128xbf16>, vector<128x128xbf16>, vector<16x128xf32> -> vector<16x128xf32>
    %c0_15 = arith.constant 0 : index
    %c0_16 = arith.constant 0 : index
    %20 = vector.load %arg7[%c0_15, %c0_16] : memref<1x128xf32, #tpu.memory_space<vmem>>, vector<1x128xf32>
    %21 = vector.broadcast %20 : vector<1x128xf32> to vector<16x128xf32>
    %22 = arith.addf %19, %21 : vector<16x128xf32>
    %cst_17 = arith.constant 0.000000e+00 : f32
    %23 = vector.broadcast %cst_17 : f32 to vector<16x128xf32>
    %24 = arith.maximumf %22, %23 : vector<16x128xf32>
    %25 = arith.truncf %24 : vector<16x128xf32> to vector<16x128xbf16>
    %c0_18 = arith.constant 0 : index
    %c0_19 = arith.constant 0 : index
    %26 = vector.load %arg8[%c0_18, %c0_19] : memref<128x8xbf16, #tpu.memory_space<vmem>>, vector<128x8xbf16>
    %cst_20 = arith.constant dense<0.000000e+00> : vector<16x8xf32>
    %27 = tpu.matmul %25, %26, %cst_20 {dimension_numbers = #tpu.dot_dimension_numbers<[1], [0], [0], [1], [0, 0, 1, 1], [], []>} : vector<16x128xbf16>, vector<128x8xbf16>, vector<16x8xf32> -> vector<16x8xf32>
    %c0_21 = arith.constant 0 : index
    %c0_22 = arith.constant 0 : index
    %28 = vector.load %arg9[%c0_21, %c0_22] : memref<1x8xf32, #tpu.memory_space<vmem>>, vector<1x8xf32>
    %29 = vector.broadcast %28 : vector<1x8xf32> to vector<16x8xf32>
    %30 = arith.addf %27, %29 : vector<16x8xf32>
    %c0_23 = arith.constant 0 : index
    %c0_24 = arith.constant 0 : index
    %31 = vector.load %arg10[%c0_23, %c0_24] : memref<16x8xf32, #tpu.memory_space<vmem>>, vector<16x8xf32>
    tpu.vector_store %arg10[%c0_23, %c0_24], %30 {strides = array<i32>} : memref<16x8xf32, #tpu.memory_space<vmem>>, vector<16x8xf32>,
    return
  }
  func.func @transform_0(%arg0: i32) -> (i32, i32) {
    %c0_i32 = arith.constant 0 : i32
    %c0_i32_0 = arith.constant 0 : i32
    return %arg0, %c0_i32 : i32, i32
  }
  func.func @transform_1(%arg0: i32) -> (i32, i32) {
    %c0_i32 = arith.constant 0 : i32
    %c0_i32_0 = arith.constant 0 : i32
    %c0_i32_1 = arith.constant 0 : i32
    return %c0_i32, %c0_i32_0 : i32, i32
  }
  func.func @transform_2(%arg0: i32) -> (i32, i32) {
    %c0_i32 = arith.constant 0 : i32
    %c0_i32_0 = arith.constant 0 : i32
    %c0_i32_1 = arith.constant 0 : i32
    return %c0_i32, %c0_i32_0 : i32, i32
  }
  func.func @transform_3(%arg0: i32) -> (i32, i32) {
    %c0_i32 = arith.constant 0 : i32
    %c0_i32_0 = arith.constant 0 : i32
    %c0_i32_1 = arith.constant 0 : i32
    return %c0_i32, %c0_i32_0 : i32, i32
  }
  func.func @transform_4(%arg0: i32) -> (i32, i32) {
    %c0_i32 = arith.constant 0 : i32
    %c0_i32_0 = arith.constant 0 : i32
    %c0_i32_1 = arith.constant 0 : i32
    return %c0_i32, %c0_i32_0 : i32, i32
  }
  func.func @transform_5(%arg0: i32) -> (i32, i32) {
    %c0_i32 = arith.constant 0 : i32
    %c0_i32_0 = arith.constant 0 : i32
    %c0_i32_1 = arith.constant 0 : i32
    return %c0_i32, %c0_i32_0 : i32, i32
  }
  func.func @transform_6(%arg0: i32) -> (i32, i32) {
    %c0_i32 = arith.constant 0 : i32
    %c0_i32_0 = arith.constant 0 : i32
    %c0_i32_1 = arith.constant 0 : i32
    return %c0_i32, %c0_i32_0 : i32, i32
  }
  func.func @transform_7(%arg0: i32) -> (i32, i32) {
    %c0_i32 = arith.constant 0 : i32
    %c0_i32_0 = arith.constant 0 : i32
    %c0_i32_1 = arith.constant 0 : i32
    return %c0_i32, %c0_i32_0 : i32, i32
  }
  func.func @transform_8(%arg0: i32) -> (i32, i32) {
    %c0_i32 = arith.constant 0 : i32
    %c0_i32_0 = arith.constant 0 : i32
    %c0_i32_1 = arith.constant 0 : i32
    return %c0_i32, %c0_i32_0 : i32, i32
  }
  func.func @transform_9(%arg0: i32) -> (i32, i32) {
    %c0_i32 = arith.constant 0 : i32
    %c0_i32_0 = arith.constant 0 : i32
    return %arg0, %c0_i32 : i32, i32
  }
}

</mosaic_0001>

<bundles_post_ra>
// kernel: dqn_forward.1
= control target key start
LH: loop header
LB: loop body
LE: loop exit
PB: predicated region body
PF: predicated region fallthrough
CT: control target
= control target key end

     0   :  { %14 = vsyncpa [#allocation3], 0  ;;  %s504_s12 = smov [#allocation2]   ;;  %s505_s14 = smov 64   ;;  %s635_s0 = inlined_call_operand.vmem [shape: f32[16,16], index: 0, kind: input, shape index: {}]   ;;  %s636_s1 = inlined_call_operand.vmem [shape: bf16[16,128], index: 1, kind: input, shape index: {}]   ;;  %s637_s2 = inlined_call_operand.vmem [shape: f32[1,128], index: 2, kind: input, shape index: {}]   ;;  %s638_s3 = inlined_call_operand.vmem [shape: bf16[128,128], index: 3, kind: input, shape index: {}]   ;;  %s639_s4 = inlined_call_operand.vmem [shape: f32[1,128], index: 4, kind: input, shape index: {}]   ;;  %s640_s5 = inlined_call_operand.hbm [shape: bf16[128,128], index: 5, kind: input, shape index: {}]   ;;  %s641_s6 = inlined_call_operand.vmem [shape: f32[1,128], index: 6, kind: input, shape index: {}]   ;;  %s642_s7 = inlined_call_operand.vmem [shape: bf16[128,8], index: 7, kind: input, shape index: {}]   ;;  %s643_s8 = inlined_call_operand.vmem [shape: f32[1,8], index: 8, kind: input, shape index: {}]   ;;  %s644_s9 = inlined_call_operand.vmem [shape: f32[16,8], index: 9, kind: output, shape index: {}]  }
   0x1   :  { %s29_s11 = sshll.u32 %s640_s5, 4  ;;  %s31_s13 = sshll.u32 %s504_s12, 4  ;;  %s30_s11 = int_to_ptr.hbm [resolvable:$true] %s29_s11  ;;  %s32_s13 = int_to_ptr.vmem [resolvable:$true] %s31_s13 }
   0x2   :  { %s506_s15 = smov 4  }
   0x3   :  { %37 = dma.hbm_to_vmem [thread:$0]  %s30_s11, 1024, %s32_s13, [#allocation3], %s505_s14, %s505_s14, %s506_s15  }
   0x4   :  { %502 = dma.done.wait [#allocation3], 1024  }
   0x5   :  { %503 = vsyncadd [#allocation3], 4294966272  ;;  %v446_v0 = vld [vmem:[%s636_s1] sm:$0xff]  ;;  %v50_v2 = vld [vmem:[%s635_s0 + $0x8] sm:$0xff]  ;;  %vm64_vm0 = vcmask 130048   ;;  %vm337_vm1 = vcmask 64512  }
   0x6   :  { %v49_v1 = vld [vmem:[%s635_s0] sm:$0xff]  ;;  %v454_v4 = vld [vmem:[%s638_s3 + $0x38] sm:$0xff]  ;;  %75 = vmatpush.bf16.msra.mxu0 %v446_v0  ;;  %v453_v5 = vld [vmem:[%s638_s3 + $0x30] sm:$0xff] }
   0x7   :  { %v51_v3 = vpack.c.bf16 %v50_v2, %v49_v1  ;;  %153 = vmatpush.bf16.msra.mxu1 %v454_v4  ;;  %v452_v6 = vld [vmem:[%s638_s3 + $0x28] sm:$0xff]  ;;  %v451_v7 = vld [vmem:[%s638_s3 + $0x20] sm:$0xff]  ;;  %v450_v8 = vld [vmem:[%s638_s3 + $0x18] sm:$0xff] }
   0x8   :  { %v449_v9 = vld [vmem:[%s638_s3 + $0x10] sm:$0xff]  ;;  %v448_v10 = vld [vmem:[%s638_s3 + $0x8] sm:$0xff]  ;;  %v447_v11 = vld [vmem:[%s638_s3] sm:$0xff] }
   0x9   :  { %349 = vmatmul.msk.bf16.vlgmr.msra.gmra.mxu0 %vm64_vm0, %v51_v3  ;;  %v462_v12 = vld [vmem:[#allocation2 + $0x38] sm:$0xff]  ;;  %v461_v13 = vld [vmem:[#allocation2 + $0x30] sm:$0xff]  ;;  %v460_v14 = vld [vmem:[#allocation2 + $0x28] sm:$0xff] }
   0xa   :  { %238 = vmatpush.bf16.msra.mxu2 %v462_v12  ;;  %v459_v15 = vld [vmem:[#allocation2 + $0x20] sm:$0xff]  ;;  %v458_v24 = vld [vmem:[#allocation2 + $0x18] sm:$0xff]  ;;  %v457_v25 = vld [vmem:[#allocation2 + $0x10] sm:$0xff] }
   0xb   :  { %154 = vmatpush.bf16.msra.mxu1 %v453_v5  ;;  %v474_v17 = vld [vmem:[%s637_s2] ss:$0 sm:$0xff]  ;;  %v456_v26 = vld [vmem:[#allocation2 + $0x8] sm:$0xff]  ;;  %v470_v28 = vld [vmem:[%s642_s7 + $0x38] sm:$0xff] }
   0xc   :  { %v455_v27 = vld [vmem:[#allocation2] sm:$0xff]  ;;  %323 = vmatpush.bf16.msra.mxu3 %v470_v28  ;;  %v469_v29 = vld [vmem:[%s642_s7 + $0x30] sm:$0xff]  ;;  %v468_v30 = vld [vmem:[%s642_s7 + $0x28] sm:$0xff] }
   0xd   :  { %v467_v31 = vld [vmem:[%s642_s7 + $0x20] sm:$0xff]  ;;  %v466_v40 = vld [vmem:[%s642_s7 + $0x18] sm:$0xff]  ;;  %v465_v41 = vld [vmem:[%s642_s7 + $0x10] sm:$0xff] }
   0xe   :  { %239 = vmatpush.bf16.msra.mxu2 %v461_v13  ;;  %v475_v33 = vld [vmem:[%s639_s4] ss:$0 sm:$0xff]  ;;  %v464_v42 = vld [vmem:[%s642_s7 + $0x8] sm:$0xff] }
   0xf   :  { %155 = vmatpush.bf16.msra.mxu1 %v452_v6  ;;  %v463_v43 = vld [vmem:[%s642_s7] sm:$0xff] }
  0x10   :  { %324 = vmatpush.bf16.msra.mxu3 %v469_v29  ;;  %v476_v45 = vld [vmem:[%s641_s6] ss:$0 sm:$0xff] }
  0x11   :  { %v477_v52 = vld [vmem:[%s643_s8] ss:$0 sm:$0xff] }
  0x12   :  { %240 = vmatpush.bf16.msra.mxu2 %v460_v14 }
  0x13   :  { %156 = vmatpush.bf16.msra.mxu1 %v451_v7 }
  0x14   :  { %325 = vmatpush.bf16.msra.mxu3 %v468_v30 }
  0x16   :  { %241 = vmatpush.bf16.msra.mxu2 %v459_v15 }
  0x17   :  { %157 = vmatpush.bf16.msra.mxu1 %v450_v8 }
  0x18   :  { %326 = vmatpush.bf16.msra.mxu3 %v467_v31 }
  0x1a   :  { %242 = vmatpush.bf16.msra.mxu2 %v458_v24 }
  0x1b   :  { %158 = vmatpush.bf16.msra.mxu1 %v449_v9 }
  0x1c   :  { %327 = vmatpush.bf16.msra.mxu3 %v466_v40 }
  0x1e   :  { %243 = vmatpush.bf16.msra.mxu2 %v457_v25 }
  0x1f   :  { %159 = vmatpush.bf16.msra.mxu1 %v448_v10 }
  0x20   :  { %328 = vmatpush.bf16.msra.mxu3 %v465_v41 }
  0x22   :  { %244 = vmatpush.bf16.msra.mxu2 %v456_v26 }
  0x23   :  { %160 = vmatpush.bf16.msra.mxu1 %v447_v11 }
  0x24   :  { %329 = vmatpush.bf16.msra.mxu3 %v464_v42 }
  0x26   :  { %245 = vmatpush.bf16.msra.mxu2 %v455_v27 }
  0x28   :  { %330 = vmatpush.bf16.msra.mxu3 %v463_v43 }
  0x86   :  { %v77_v16 = vpop.f32.mrf.mxu0 }
  0x87   :  { %v78_v18 = vadd.f32 %v474_v17, %v77_v16 }
  0x89   :  { %v82_v21 = vmax.f32 %v78_v18, 0.0 }
  0x8e   :  { %v79_v19 = vpop.f32.mrf.mxu0 }
  0x8f   :  { %v80_v20 = vadd.f32 %v474_v17, %v79_v19 }
  0x91   :  { %v83_v22 = vmax.f32 %v80_v20, 0.0 }
  0x93   :  { %v84_v23 = vpack.c.bf16 %v83_v22, %v82_v21 }
  0x95   :  { %161 = vmatmul.bf16.vlgmr.msra.gmra.mxu1 %v84_v23 }
 0x112   :  { %v162_v32 = vpop.f32.mrf.mxu1 }
 0x113   :  { %v163_v34 = vadd.f32 %v475_v33, %v162_v32 }
 0x115   :  { %v167_v37 = vmax.f32 %v163_v34, 0.0 }
 0x11a   :  { %v164_v35 = vpop.f32.mrf.mxu1 }
 0x11b   :  { %v165_v36 = vadd.f32 %v475_v33, %v164_v35 }
 0x11d   :  { %v168_v38 = vmax.f32 %v165_v36, 0.0 }
 0x11f   :  { %v169_v39 = vpack.c.bf16 %v168_v38, %v167_v37 }
 0x121   :  { %246 = vmatmul.bf16.vlgmr.msra.gmra.mxu2 %v169_v39 }
 0x1a4   :  { %v247_v44 = vpop.f32.mrf.mxu2 }
 0x1a5   :  { %v248_v46 = vadd.f32 %v476_v45, %v247_v44 }
 0x1a7   :  { %v252_v49 = vmax.f32 %v248_v46, 0.0 }
 0x1ac   :  { %v249_v47 = vpop.f32.mrf.mxu2 }
 0x1ad   :  { %v250_v48 = vadd.f32 %v476_v45, %v249_v47 }
 0x1af   :  { %v253_v50 = vmax.f32 %v250_v48, 0.0 }
 0x1b1   :  { %v254_v51 = vpack.c.bf16 %v253_v50, %v252_v49 }
 0x1b3   :  { %331 = vmatmul.bf16.vlgmr.msra.gmra.mxu3 %v254_v51 }
 0x236   :  { %v332_v53 = vpop.f32.mrf.mxu3 }
 0x237   :  { %v333_v54 = vadd.f32 %v477_v52, %v332_v53 }
 0x239   :  { %338 = vst.msk [vmem:[%s644_s9] sm:$0xff] %vm337_vm1, %v333_v54 }
 0x23e   :  { %v334_v55 = vpop.f32.mrf.mxu3 }
 0x23f   :  { %v335_v56 = vadd.f32 %v477_v52, %v334_v55 }
 0x241   :  { %339 = vst.msk [vmem:[%s644_s9 + $0x8] sm:$0xff] %vm337_vm1, %v335_v56 }
 0x242   :  { %344 = vsyncpa [#allocation3], 1 }

</bundles_post_ra>
